<compile_context>
chip_gen: v6e
topology: v6e:2x2x1
jax: 0.10.0
libtpu: 0.0.40
codegen_flags: <defaults>
</compile_context>

<pallas_src>
import functools

import jax
import jax.numpy as jnp
from jax import lax
from jax.experimental import pallas as pl
from jax.experimental.pallas import tpu as pltpu


_LANE = 128
_SUBLANE = 8
_ROW_ALIGN = 16                    # bf16 packs 2 rows/sublane: align M tiles to 16
_FUSED_ROWS_MAX = 512              # single-program fused path only for tiny M
_FUSED_BYTES_MAX = 6 * 1024 * 1024


def _round_up(x, m):
    return (x + m - 1) // m * m


@functools.lru_cache(maxsize=None)
def _vmem_limits():
    """Per-generation scoped-VMEM limit and tile-sizing budget.

    128 MiB parts (v5e/v6e) -> 64 MiB limit / 48 MiB budget;
    64 MiB-per-TC parts (v7x) -> 32 MiB / 24 MiB.  Falls back to the
    v7x-safe values if the hardware query is unavailable.
    """
    cap = None
    try:
        info = pltpu.get_tpu_info()
        cap = int(getattr(info, "vmem_capacity_bytes", 0)) or None
    except Exception:
        cap = None
    if cap is None:
        cap = 64 * 1024 * 1024
    limit = max(32 * 1024 * 1024, min(cap // 2, 64 * 1024 * 1024))
    return limit, (limit * 3) // 4


def _compiler_params(sem):
    limit, _ = _vmem_limits()
    return pltpu.CompilerParams(dimension_semantics=sem, vmem_limit_bytes=limit)


# --------------------------- Pallas kernels ---------------------------------

def _fused_kernel(p_ref, w_ref, g_ref, beta_ref, o_ref, *,
                  m_real, n_pad, eps, use_relu):
    """Whole ConvReg in one program: conv matmul + BN(batch stats) + ReLU.

    Conv bias is omitted (cancelled exactly by the BN mean subtraction).
    Zero-padded patch rows give y == 0 exactly, so they vanish from the sums;
    the centered variance just needs the -mean contribution of those rows
    removed (exact, n_pad is a static int).
    """
    y = jnp.dot(p_ref[...], w_ref[...], preferred_element_type=jnp.float32)
    inv_m = 1.0 / m_real
    mean = jnp.sum(y, axis=0, keepdims=True) * inv_m
    d = y - mean
    var = (jnp.sum(d * d, axis=0, keepdims=True)
           - float(n_pad) * mean * mean) * inv_m
    inv = lax.rsqrt(jnp.maximum(var, 0.0) + eps)
    out = d * (inv * g_ref[...]) + beta_ref[...]
    if use_relu:
        out = jnp.maximum(out, 0.0)
    o_ref[...] = out


def _stats_kernel(p_ref, w_ref, psum_ref, psq_ref, *, tm):
    """Tiled pass 1 (recompute variant): per-tile partial channel sums only.

    y stays in VMEM and is never written to HBM.  No bias, no row mask:
    padded patch rows produce exact zeros.  Partial sums go to distinct
    (8, Cout_pad) blocks per grid step ('parallel', megacore friendly).
    """
    y = jnp.dot(p_ref[...], w_ref[...], preferred_element_type=jnp.float32)
    c = y.shape[-1]
    yg = y.reshape(tm // _SUBLANE, _SUBLANE, c)
    psum_ref[...] = yg.sum(axis=0)
    psq_ref[...] = (yg * yg).sum(axis=0)


def _apply_kernel(p_ref, w_ref, s_ref, t_ref, o_ref, *, use_relu):
    """Tiled pass 2 (recompute variant): redo matmul, BN folded to one FMA + ReLU."""
    y = jnp.dot(p_ref[...], w_ref[...], preferred_element_type=jnp.float32)
    out = y * s_ref[...] + t_ref[...]
    if use_relu:
        out = jnp.maximum(out, 0.0)
    o_ref[...] = out


def _conv_stats_y_kernel(p_ref, w_ref, y_ref, psum_ref, psq_ref, *, tm):
    """Tiled pass 1 (y-round-trip variant for large K): also materializes f32 y."""
    y = jnp.dot(p_ref[...], w_ref[...], preferred_element_type=jnp.float32)
    y_ref[...] = y
    c = y.shape[-1]
    yg = y.reshape(tm // _SUBLANE, _SUBLANE, c)
    psum_ref[...] = yg.sum(axis=0)
    psq_ref[...] = (yg * yg).sum(axis=0)


def _affine_relu_kernel(y_ref, s_ref, t_ref, o_ref, *, use_relu):
    """Tiled pass 2 (y-round-trip variant): single FMA + optional ReLU."""
    out = y_ref[...] * s_ref[...] + t_ref[...]
    if use_relu:
        out = jnp.maximum(out, 0.0)
    o_ref[...] = out


# --------------------------- glue (plain JAX) --------------------------------

def _im2col(x_nhwc, kh, kw, stride, pad, k_pad):
    """Patches [N*Ho*Wo, k_pad] in (kh, kw, C) order, K zero-padded to k_pad.

    Runs in the input dtype (bf16 here) so the materialized array is half-width.
    TODO(synk): build patches inside the kernel via halo DMA for large maps.
    """
    n, h, w, c = x_nhwc.shape
    xp = jnp.pad(x_nhwc, ((0, 0), (pad, pad), (pad, pad), (0, 0)))
    ho = (h + 2 * pad - kh) // stride + 1
    wo = (w + 2 * pad - kw) // stride + 1
    cols = [xp[:, i:i + stride * ho:stride, j:j + stride * wo:stride, :]
            for i in range(kh) for j in range(kw)]
    k_dim = kh * kw * c
    if k_pad > k_dim:
        cols.append(jnp.zeros((n, ho, wo, k_pad - k_dim), dtype=x_nhwc.dtype))
    patches = jnp.concatenate(cols, axis=-1)          # (N, Ho, Wo, k_pad)
    return patches.reshape(n * ho * wo, k_pad), ho, wo


def _pick_conv_cfg(s_shape, t_shape):
    _, _, s_h, s_w = s_shape
    _, _, t_h, t_w = t_shape
    if s_h == 2 * t_h:
        return dict(kh=3, kw=3, stride=2, pad=1)
    elif s_h * 2 == t_h:
        # TODO(synk): ConvTranspose2d(kernel=4, stride=2, padding=1) branch.
        raise NotImplementedError("ConvTranspose2d branch not implemented")
    elif s_h >= t_h:
        return dict(kh=1 + s_h - t_h, kw=1 + s_w - t_w, stride=1, pad=0)
    else:
        raise NotImplementedError(f"student size {s_h}, teacher size {t_h}")


def _pick_tm(m_rows, k_pad, c_out_p, budget):
    """Largest 16-aligned row tile fitting the VMEM budget (double-buffered).

    Charges: bf16 weight block (x2 buffers), psum/psq stat outputs (x2 buffers
    each), scale/shift/gamma/beta rows, plus per-row bf16 patches in + f32 out.
    """
    fixed = (2 * k_pad * c_out_p * 2                       # weight, x2 buffers
             + 2 * 2 * 2 * _SUBLANE * c_out_p * 4          # psum/psq, x2 buffers
             + 8 * c_out_p * 4)                            # small per-channel rows
    per_row = 2 * (k_pad * 2 + c_out_p * 4)                # patches-in + f32 y/out, x2
    avail = max(budget - fixed, per_row * _ROW_ALIGN)
    tm = min(avail // per_row, 2048, _round_up(m_rows, _ROW_ALIGN))
    return max(_ROW_ALIGN, (tm // _ROW_ALIGN) * _ROW_ALIGN)


def conv_reg_forward(x, weight, bias, gamma, beta, t_shape, use_relu=True,
                     eps=1e-5, force_tiled=False, force_roundtrip=False,
                     tm_override=None, out_layout="NCHW"):
    """x: NCHW float32.  weight: [Cout, Cin, kh, kw] (PyTorch layout).

    `bias` is accepted for API parity but unused: the BatchNorm batch-mean
    subtraction cancels a per-channel conv bias exactly in the forward output.
    """
    del bias
    cfg = _pick_conv_cfg(x.shape, t_shape)
    kh, kw, stride, pad = cfg["kh"], cfg["kw"], cfg["stride"], cfg["pad"]
    n, c_in, h, w = x.shape
    c_out = weight.shape[0]
    c_out_p = _round_up(c_out, _LANE)          # lane-dense output channels
    k_dim = kh * kw * c_in
    k_pad = _round_up(k_dim, _LANE)            # lane-dense contraction dim

    # NCHW -> NHWC in bf16 (halves the im2col HBM traffic), im2col with K
    # padded to a multiple of 128 (zero columns contribute nothing to the dot).
    x_nhwc = jnp.transpose(x, (0, 2, 3, 1)).astype(jnp.bfloat16)
    patches, ho, wo = _im2col(x_nhwc, kh, kw, stride, pad, k_pad)   # [M, k_pad] bf16
    m_rows = patches.shape[0]

    # [Cout, Cin, kh, kw] -> [K, Cout] in matching (kh, kw, Cin) order, padded
    # to (k_pad, c_out_p), cast to bf16 (MXU full rate; accumulation stays f32).
    w_mat = jnp.transpose(weight, (2, 3, 1, 0)).reshape(k_dim, c_out)
    w_mat = jnp.pad(w_mat, ((0, k_pad - k_dim), (0, c_out_p - c_out)))
    w_mat = w_mat.astype(jnp.bfloat16)

    g_row = jnp.pad(gamma.astype(jnp.float32), (0, c_out_p - c_out)).reshape(1, c_out_p)
    bt_row = jnp.pad(beta.astype(jnp.float32), (0, c_out_p - c_out)).reshape(1, c_out_p)

    _, vmem_budget = _vmem_limits()
    m_pad16 = _round_up(m_rows, _ROW_ALIGN)
    fused_bytes = (2 * m_pad16 * k_pad + 2 * k_pad * c_out_p
                   + 4 * m_pad16 * c_out_p + 8 * c_out_p * 4)

    if (not force_tiled and m_pad16 <= _FUSED_ROWS_MAX
            and fused_bytes <= _FUSED_BYTES_MAX):
        # ---- Fully fused single call: conv + stats + BN + ReLU (tiny M only,
        #      so v7x doesn't lose dual-TC parallelism on anything sizable). ---
        patches_p = jnp.pad(patches, ((0, m_pad16 - m_rows), (0, 0)))
        out_flat = pl.pallas_call(
            functools.partial(_fused_kernel, m_real=m_rows,
                              n_pad=m_pad16 - m_rows, eps=eps, use_relu=use_relu),
            out_shape=jax.ShapeDtypeStruct((m_pad16, c_out_p), jnp.float32),
            grid=(1,),
            in_specs=[
                pl.BlockSpec((m_pad16, k_pad), lambda i: (0, 0)),
                pl.BlockSpec((k_pad, c_out_p), lambda i: (0, 0)),
                pl.BlockSpec((1, c_out_p), lambda i: (0, 0)),
                pl.BlockSpec((1, c_out_p), lambda i: (0, 0)),
            ],
            out_specs=pl.BlockSpec((m_pad16, c_out_p), lambda i: (0, 0)),
            compiler_params=_compiler_params(("arbitrary",)),
        )(patches_p, w_mat, g_row, bt_row)
    else:
        # ---- Tiled two-pass path ---------------------------------------------
        tm = tm_override if tm_override is not None else _pick_tm(
            m_rows, k_pad, c_out_p, vmem_budget)
        num_tiles = (m_rows + tm - 1) // tm
        m_pad = num_tiles * tm
        patches_p = jnp.pad(patches, ((0, m_pad - m_rows), (0, 0)))

        # Recompute variant (patches read twice, y never written to HBM) wins
        # whenever one bf16 patch row is cheaper to re-read than an f32 y row
        # is to write + read back; otherwise fall back to the y round-trip.
        recompute = (not force_roundtrip) and (k_pad * 2 < 4 * c_out_p * 4)

        p_spec = pl.BlockSpec((tm, k_pad), lambda i: (i, 0))
        w_spec = pl.BlockSpec((k_pad, c_out_p), lambda i: (0, 0))
        row_spec = pl.BlockSpec((1, c_out_p), lambda i: (0, 0))
        y_spec = pl.BlockSpec((tm, c_out_p), lambda i: (i, 0))
        stat_spec = pl.BlockSpec((_SUBLANE, c_out_p), lambda i: (i, 0))
        stat_shape = jax.ShapeDtypeStruct((num_tiles * _SUBLANE, c_out_p), jnp.float32)

        if recompute:
            # Pass 1: stats only (y stays in VMEM).
            psum, psq = pl.pallas_call(
                functools.partial(_stats_kernel, tm=tm),
                out_shape=(stat_shape, stat_shape),
                grid=(num_tiles,),
                in_specs=[p_spec, w_spec],
                out_specs=(stat_spec, stat_spec),
                compiler_params=_compiler_params(("parallel",)),
            )(patches_p, w_mat)
            y = None
        else:
            # Pass 1: conv matmul + stats, materializing f32 y for pass 2.
            y, psum, psq = pl.pallas_call(
                functools.partial(_conv_stats_y_kernel, tm=tm),
                out_shape=(jax.ShapeDtypeStruct((m_pad, c_out_p), jnp.float32),
                           stat_shape, stat_shape),
                grid=(num_tiles,),
                in_specs=[p_spec, w_spec],
                out_specs=(y_spec, stat_spec, stat_spec),
                compiler_params=_compiler_params(("parallel",)),
            )(patches_p, w_mat)

        # Tiny JAX reduction + BN scale/shift folding (once, not per grid step).
        sum_c = jnp.sum(psum, axis=0)[:c_out]
        sq_c = jnp.sum(psq, axis=0)[:c_out]
        mean = sum_c / m_rows
        var = jnp.maximum(sq_c / m_rows - mean * mean, 0.0)     # biased, clamped
        inv = lax.rsqrt(var + eps)
        scale = gamma.astype(jnp.float32) * inv
        shift = beta.astype(jnp.float32) - mean * scale
        scale_p = jnp.pad(scale, (0, c_out_p - c_out)).reshape(1, c_out_p)
        shift_p = jnp.pad(shift, (0, c_out_p - c_out)).reshape(1, c_out_p)

        if recompute:
            # Pass 2: recompute matmul, BN as one FMA + ReLU, lane-dense stores.
            out_flat = pl.pallas_call(
                functools.partial(_apply_kernel, use_relu=use_relu),
                out_shape=jax.ShapeDtypeStruct((m_pad, c_out_p), jnp.float32),
                grid=(num_tiles,),
                in_specs=[p_spec, w_spec, row_spec, row_spec],
                out_specs=y_spec,
                compiler_params=_compiler_params(("parallel",)),
            )(patches_p, w_mat, scale_p, shift_p)
        else:
            # Pass 2: pure FMA + ReLU on the stored y (HBM-bound).
            out_flat = pl.pallas_call(
                functools.partial(_affine_relu_kernel, use_relu=use_relu),
                out_shape=jax.ShapeDtypeStruct((m_pad, c_out_p), jnp.float32),
                grid=(num_tiles,),
                in_specs=[y_spec, row_spec, row_spec],
                out_specs=y_spec,
                compiler_params=_compiler_params(("parallel",)),
            )(y, scale_p, shift_p)

    # [M_pad, Cout_pad] -> valid rows/channels -> NHWC (lane-dense, no transpose).
    out = out_flat[:m_rows, :c_out].reshape(n, ho, wo, c_out)
    if out_layout == "NHWC":
        return out
    # TODO(synk): consume NHWC downstream and skip this lane-crossing transpose.
    return jnp.transpose(out, (0, 3, 1, 2))


# --------------------------- reference + driver ------------------------------

def _reference(x, weight, bias, gamma, beta, stride, pad, eps, use_relu):
    y = jax.lax.conv_general_dilated(
        x, weight, (stride, stride), ((pad, pad), (pad, pad)),
        dimension_numbers=("NCHW", "OIHW", "NCHW"))
    y = y + bias[None, :, None, None]
    mean = y.mean(axis=(0, 2, 3), keepdims=True)
    var = y.var(axis=(0, 2, 3), keepdims=True)          # biased
    y = (y - mean) * jax.lax.rsqrt(var + eps)
    y = y * gamma[None, :, None, None] + beta[None, :, None, None]
    return jnp.maximum(y, 0.0) if use_relu else y


def _run_case(key, s_shape, t_shape, use_relu, force_tiled=False,
              force_roundtrip=False, tm_override=None):
    kx, kw_, kb, kg, kbeta = jax.random.split(key, 5)
    s_n, s_c, s_h, s_w = s_shape
    t_c = t_shape[1]
    cfg = _pick_conv_cfg(s_shape, t_shape)

    x = jax.random.normal(kx, s_shape, dtype=jnp.float32)
    weight = 0.1 * jax.random.normal(
        kw_, (t_c, s_c, cfg["kh"], cfg["kw"]), dtype=jnp.float32)
    bias = 0.1 * jax.random.normal(kb, (t_c,), dtype=jnp.float32)
    gamma = 1.0 + 0.1 * jax.random.normal(kg, (t_c,), dtype=jnp.float32)
    beta = 0.1 * jax.random.normal(kbeta, (t_c,), dtype=jnp.float32)

    out = conv_reg_forward(x, weight, bias, gamma, beta, t_shape,
                           use_relu=use_relu, force_tiled=force_tiled,
                           force_roundtrip=force_roundtrip,
                           tm_override=tm_override)
    out = jax.block_until_ready(out)

    ref = _reference(x, weight, bias, gamma, beta, cfg["stride"], cfg["pad"],
                     1e-5, use_relu)
    assert out.shape == tuple(t_shape), (out.shape, t_shape)
    # bf16 conv operands (f32 accumulation) -> relax tolerance vs the f32 reference.
    assert jnp.allclose(out, ref, atol=3e-2, rtol=3e-2), "mismatch vs reference"


if __name__ == "__main__":
    key = jax.random.PRNGKey(0)
    k1, k2, k3 = jax.random.split(key, 3)

    # Case 1: ConvReg(s_shape=(2,4,16,16), t_shape=(2,8,8,8))
    #   -> s_H == 2*t_H -> Conv2d(4, 8, kernel_size=3, stride=2, padding=1).
    #   Tiny problem: takes the fully-fused single-pallas_call path.
    _run_case(k1, (2, 4, 16, 16), (2, 8, 8, 8), use_relu=True)

    # Case 2: same branch, larger, forcing the tiled recompute path (stats-only
    # pass 1 + recompute pass 2) with a non-multiple-of-tile M to exercise the
    # zero-row padding and the parallel partial sums.
    _run_case(k2, (2, 4, 20, 20), (2, 8, 10, 10), use_relu=True,
              force_tiled=True, tm_override=64)

    # Case 3: forcing the y-round-trip tiled variant (the large-K fallback)
    # so that path is also compiled and checked.
    _run_case(k3, (2, 4, 16, 16), (2, 8, 8, 8), use_relu=True,
              force_tiled=True, force_roundtrip=True, tm_override=64)

    print("KERNEL_OK")
</pallas_src>

<mosaic_0001>
module attributes {stable_mosaic.version = 11 : i64} {
  func.func @_fused_kernel(%arg0: i32, %arg1: memref<128x128xbf16, #tpu.memory_space<vmem>>, %arg2: memref<128x128xbf16, #tpu.memory_space<vmem>>, %arg3: memref<1x128xf32, #tpu.memory_space<vmem>>, %arg4: memref<1x128xf32, #tpu.memory_space<vmem>>, %arg5: memref<128x128xf32, #tpu.memory_space<vmem>>) attributes {dimension_semantics = [#tpu.dimension_semantics<arbitrary>], iteration_bounds = array<i64: 1>, scalar_prefetch = 0 : i64, scratch_operands = 0 : i64, tpu.core_type = #tpu.core_type<tc>, window_params = [{pipeline_mode = #tpu.pipeline_mode<synchronous>, transform_indices = @transform_0, window_bounds = array<i64: 128, 128>}, {pipeline_mode = #tpu.pipeline_mode<synchronous>, transform_indices = @transform_1, window_bounds = array<i64: 128, 128>}, {pipeline_mode = #tpu.pipeline_mode<synchronous>, transform_indices = @transform_2, window_bounds = array<i64: 1, 128>}, {pipeline_mode = #tpu.pipeline_mode<synchronous>, transform_indices = @transform_3, window_bounds = array<i64: 1, 128>}, {pipeline_mode = #tpu.pipeline_mode<synchronous>, transform_indices = @transform_4, window_bounds = array<i64: 128, 128>}]} {
    %c0 = arith.constant 0 : index
    %c0_0 = arith.constant 0 : index
    %0 = vector.load %arg1[%c0, %c0_0] : memref<128x128xbf16, #tpu.memory_space<vmem>>, vector<128x128xbf16>
    %c0_1 = arith.constant 0 : index
    %c0_2 = arith.constant 0 : index
    %1 = vector.load %arg2[%c0_1, %c0_2] : memref<128x128xbf16, #tpu.memory_space<vmem>>, vector<128x128xbf16>
    %cst = arith.constant dense<0.000000e+00> : vector<128x128xf32>
    %2 = tpu.matmul %0, %1, %cst {dimension_numbers = #tpu.dot_dimension_numbers<[1], [0], [0], [1], [0, 0, 1, 1], [], []>} : vector<128x128xbf16>, vector<128x128xbf16>, vector<128x128xf32> -> vector<128x128xf32>
    %cst_3 = arith.constant dense<0.000000e+00> : vector<128xf32>
    %3 = vector.multi_reduction <add>, %2, %cst_3 [0] : vector<128x128xf32> to vector<128xf32>
    %4 = vector.shape_cast %3 : vector<128xf32> to vector<1x128xf32>
    %cst_4 = arith.constant 7.812500e-03 : f32
    %5 = vector.broadcast %cst_4 : f32 to vector<1x128xf32>
    %6 = arith.mulf %4, %5 : vector<1x128xf32>
    %7 = vector.broadcast %6 : vector<1x128xf32> to vector<128x128xf32>
    %8 = arith.subf %2, %7 : vector<128x128xf32>
    %9 = arith.mulf %8, %8 : vector<128x128xf32>
    %cst_5 = arith.constant dense<0.000000e+00> : vector<128xf32>
    %10 = vector.multi_reduction <add>, %9, %cst_5 [0] : vector<128x128xf32> to vector<128xf32>
    %11 = vector.shape_cast %10 : vector<128xf32> to vector<1x128xf32>
    %cst_6 = arith.constant 0.000000e+00 : f32
    %12 = vector.broadcast %cst_6 : f32 to vector<1x128xf32>
    %13 = arith.mulf %12, %6 : vector<1x128xf32>
    %14 = arith.mulf %13, %6 : vector<1x128xf32>
    %15 = arith.subf %11, %14 : vector<1x128xf32>
    %cst_7 = arith.constant 7.812500e-03 : f32
    %16 = vector.broadcast %cst_7 : f32 to vector<1x128xf32>
    %17 = arith.mulf %15, %16 : vector<1x128xf32>
    %cst_8 = arith.constant 0.000000e+00 : f32
    %18 = vector.broadcast %cst_8 : f32 to vector<1x128xf32>
    %19 = arith.maximumf %17, %18 : vector<1x128xf32>
    %cst_9 = arith.constant 9.99999974E-6 : f32
    %20 = vector.broadcast %cst_9 : f32 to vector<1x128xf32>
    %21 = arith.addf %19, %20 : vector<1x128xf32>
    %22 = math.rsqrt %21 : vector<1x128xf32>
    %c0_10 = arith.constant 0 : index
    %c0_11 = arith.constant 0 : index
    %23 = vector.load %arg3[%c0_10, %c0_11] : memref<1x128xf32, #tpu.memory_space<vmem>>, vector<1x128xf32>
    %24 = arith.mulf %22, %23 : vector<1x128xf32>
    %25 = vector.broadcast %24 : vector<1x128xf32> to vector<128x128xf32>
    %26 = arith.mulf %8, %25 : vector<128x128xf32>
    %c0_12 = arith.constant 0 : index
    %c0_13 = arith.constant 0 : index
    %27 = vector.load %arg4[%c0_12, %c0_13] : memref<1x128xf32, #tpu.memory_space<vmem>>, vector<1x128xf32>
    %28 = vector.broadcast %27 : vector<1x128xf32> to vector<128x128xf32>
    %29 = arith.addf %26, %28 : vector<128x128xf32>
    %cst_14 = arith.constant 0.000000e+00 : f32
    %30 = vector.broadcast %cst_14 : f32 to vector<128x128xf32>
    %31 = arith.maximumf %29, %30 : vector<128x128xf32>
    %c0_15 = arith.constant 0 : index
    %c0_16 = arith.constant 0 : index
    %32 = vector.load %arg5[%c0_15, %c0_16] : memref<128x128xf32, #tpu.memory_space<vmem>>, vector<128x128xf32>
    tpu.vector_store %arg5[%c0_15, %c0_16], %31 {strides = array<i32>} : memref<128x128xf32, #tpu.memory_space<vmem>>, vector<128x128xf32>,
    return
  }
  func.func @transform_0(%arg0: i32) -> (i32, i32) {
    %c0_i32 = arith.constant 0 : i32
    %c0_i32_0 = arith.constant 0 : i32
    %c0_i32_1 = arith.constant 0 : i32
    return %c0_i32, %c0_i32_0 : i32, i32
  }
  func.func @transform_1(%arg0: i32) -> (i32, i32) {
    %c0_i32 = arith.constant 0 : i32
    %c0_i32_0 = arith.constant 0 : i32
    %c0_i32_1 = arith.constant 0 : i32
    return %c0_i32, %c0_i32_0 : i32, i32
  }
  func.func @transform_2(%arg0: i32) -> (i32, i32) {
    %c0_i32 = arith.constant 0 : i32
    %c0_i32_0 = arith.constant 0 : i32
    %c0_i32_1 = arith.constant 0 : i32
    return %c0_i32, %c0_i32_0 : i32, i32
  }
  func.func @transform_3(%arg0: i32) -> (i32, i32) {
    %c0_i32 = arith.constant 0 : i32
    %c0_i32_0 = arith.constant 0 : i32
    %c0_i32_1 = arith.constant 0 : i32
    return %c0_i32, %c0_i32_0 : i32, i32
  }
  func.func @transform_4(%arg0: i32) -> (i32, i32) {
    %c0_i32 = arith.constant 0 : i32
    %c0_i32_0 = arith.constant 0 : i32
    %c0_i32_1 = arith.constant 0 : i32
    return %c0_i32, %c0_i32_0 : i32, i32
  }
}

</mosaic_0001>

<bundles_post_ra>
// kernel: tpu_custom_call.1
= control target key start
LH: loop header
LB: loop body
LE: loop exit
PB: predicated region body
PF: predicated region fallthrough
CT: control target
= control target key end

     0   :  { %9 = vsyncpa [#allocation3], 0  ;;  %s705_s0 = inlined_call_operand.hbm [shape: bf16[128,128], index: 0, kind: input, shape index: {}]   ;;  %s706_s1 = inlined_call_operand.hbm [shape: bf16[128,128], index: 1, kind: input, shape index: {}]   ;;  %s707_s2 = inlined_call_operand.vmem [shape: f32[1,128], index: 2, kind: input, shape index: {}]   ;;  %s708_s3 = inlined_call_operand.vmem [shape: f32[1,128], index: 3, kind: input, shape index: {}]   ;;  %s709_s4 = inlined_call_operand.hbm [shape: f32[128,128], index: 4, kind: output, shape index: {}]  }
   0x1   :  { %10 = vsyncpa [#allocation6], 0 }
   0x2   :  { %11 = vsyncpa [#allocation4], 0  ;;  %s621_s15 = smov [#allocation2]  }
   0x3   :  { %s17_s16 = sshll.u32 %s621_s15, 4  ;;  %s18_s16 = int_to_ptr.vmem [resolvable:$true] %s17_s16 }
   0x4   :  { %s563_s17 = scalar_lea.vmem %s18_s16, 1024  ;;  %p568_p1 = scmp.lt.s32.totalorder %s18_s16, %s18_s16 }
   0x5   :  { %p564_p0 = scmp.ne.s32.totalorder %s18_s16, %s563_s17  ;;  %p569_p2 = scmp.lt.s32.totalorder %s563_s17, %s563_s17 }
   0x7   :  { %p570_p3 = por %p569_p2, %p568_p1 }
   0x9   :  { %p571_p4 = pnand %p570_p3, %p564_p0 }
   0xb   :  { %574 = shalt.err (!%p571_p4)
}
   0xc   :  { %s622_s18 = smov 64   ;;  %s623_s19 = smov 4  }
   0xd   :  { %23 = dma.hbm_to_vmem [thread:$0]  %s705_s0, 1024, %s18_s16, [#allocation3], %s622_s18, %s622_s18, %s623_s19  }
   0xe   :  { %s624_s22 = smov [#allocation5]  }
   0xf   :  { %s29_s23 = sshll.u32 %s624_s22, 4  ;;  %s30_s23 = int_to_ptr.vmem [resolvable:$true] %s29_s23 }
  0x10   :  { %s583_s24 = scalar_lea.vmem %s30_s23, 1024  ;;  %p588_p6 = scmp.lt.s32.totalorder %s30_s23, %s30_s23 }
  0x11   :  { %p584_p5 = scmp.ne.s32.totalorder %s30_s23, %s583_s24  ;;  %p589_p7 = scmp.lt.s32.totalorder %s583_s24, %s583_s24 }
  0x13   :  { %p590_p8 = por %p589_p7, %p588_p6 }
  0x15   :  { %p591_p9 = pnand %p590_p8, %p584_p5 }
  0x17   :  { %594 = shalt.err (!%p591_p9)
}
  0x18   :  { %35 = dma.hbm_to_vmem [thread:$0]  %s706_s1, 1024, %s30_s23, [#allocation6], %s622_s18, %s622_s18, %s623_s19  }
  0x19   :  { %615 = dma.done.wait [#allocation3], 1024  }
  0x1a   :  { %616 = vsyncadd [#allocation3], 4294966272 }
  0x1b   :  { %617 = dma.done.wait [#allocation6], 1024  }
  0x1c   :  { %618 = vsyncadd [#allocation6], 4294966272  ;;  %v537_v0 = vld [vmem:[#allocation5 + $0x38] sm:$0xff]   ;;  %v538_v1 = vld [vmem:[#allocation5 + $0x30] sm:$0xff]  }
  0x1d   :  { %482 = vmatprep.subr.bf16.mxu0 %v537_v0  ;;  %514 = vmatprep.subr.bf16.mxu1 %v537_v0  ;;  %v539_v2 = vld [vmem:[#allocation5 + $0x28] sm:$0xff]   ;;  %v540_v3 = vld [vmem:[#allocation5 + $0x20] sm:$0xff]   ;;  %v541_v5 = vld [vmem:[#allocation5 + $0x18] sm:$0xff]  }
  0x1e   :  { %483 = vmatpush3.bf16.msra.mxu0 %v537_v0  ;;  %522 = vmatpush3.bf16.msra.mxu1 %v537_v0  ;;  %v545_v4 = vld [vmem:[#allocation2] sm:$0xff]   ;;  %v542_v7 = vld [vmem:[#allocation5 + $0x10] sm:$0xff]   ;;  %v543_v8 = vld [vmem:[#allocation5 + $0x8] sm:$0xff]  }
  0x1f   :  { %484 = vmatprep.subr.bf16.mxu0 %v538_v1  ;;  %515 = vmatprep.subr.bf16.mxu1 %v538_v1  ;;  %v549_v6 = vld [vmem:[#allocation2 + $0x20] sm:$0xff]   ;;  %v546_v10 = vld [vmem:[#allocation2 + $0x8] sm:$0xff]   ;;  %v547_v12 = vld [vmem:[#allocation2 + $0x10] sm:$0xff]  }
  0x20   :  { %498 = vmatprep.mubr.bf16.mxu0 %v545_v4  ;;  %506 = vmatprep.mubr.bf16.mxu1 %v549_v6  ;;  %v544_v9 = vld [vmem:[#allocation5] sm:$0xff]   ;;  %v550_v11 = vld [vmem:[#allocation2 + $0x28] sm:$0xff]   ;;  %v551_v13 = vld [vmem:[#allocation2 + $0x30] sm:$0xff]  }
  0x21   :  { %v548_v14 = vld [vmem:[#allocation2 + $0x18] sm:$0xff]  }
  0x22   :  { %485 = vmatpush3.bf16.msra.mxu0 %v538_v1  ;;  %523 = vmatpush3.bf16.msra.mxu1 %v538_v1  ;;  %v552_v15 = vld [vmem:[#allocation2 + $0x38] sm:$0xff]  }
  0x23   :  { %486 = vmatprep.subr.bf16.mxu0 %v539_v2  ;;  %516 = vmatprep.subr.bf16.mxu1 %v539_v2 }
  0x26   :  { %487 = vmatpush3.bf16.msra.mxu0 %v539_v2  ;;  %524 = vmatpush3.bf16.msra.mxu1 %v539_v2 }
  0x27   :  { %488 = vmatprep.subr.bf16.mxu0 %v540_v3  ;;  %517 = vmatprep.subr.bf16.mxu1 %v540_v3 }
  0x2a   :  { %489 = vmatpush3.bf16.msra.mxu0 %v540_v3  ;;  %525 = vmatpush3.bf16.msra.mxu1 %v540_v3 }
  0x2b   :  { %490 = vmatprep.subr.bf16.mxu0 %v541_v5  ;;  %518 = vmatprep.subr.bf16.mxu1 %v541_v5 }
  0x2e   :  { %491 = vmatpush3.bf16.msra.mxu0 %v541_v5  ;;  %526 = vmatpush3.bf16.msra.mxu1 %v541_v5 }
  0x2f   :  { %492 = vmatprep.subr.bf16.mxu0 %v542_v7  ;;  %519 = vmatprep.subr.bf16.mxu1 %v542_v7 }
  0x32   :  { %493 = vmatpush3.bf16.msra.mxu0 %v542_v7  ;;  %527 = vmatpush3.bf16.msra.mxu1 %v542_v7 }
  0x33   :  { %494 = vmatprep.subr.bf16.mxu0 %v543_v8  ;;  %520 = vmatprep.subr.bf16.mxu1 %v543_v8 }
  0x36   :  { %495 = vmatpush3.bf16.msra.mxu0 %v543_v8  ;;  %528 = vmatpush3.bf16.msra.mxu1 %v543_v8 }
  0x37   :  { %496 = vmatprep.subr.bf16.mxu0 %v544_v9  ;;  %521 = vmatprep.subr.bf16.mxu1 %v544_v9 }
  0x3a   :  { %497 = vmatpush3.bf16.msra.mxu0 %v544_v9  ;;  %529 = vmatpush3.bf16.msra.mxu1 %v544_v9 }
  0x3d   :  { %499 = vmatmul.mubr.bf16.vlgmr.msra.gmra.mxu0 %v546_v10  ;;  %507 = vmatmul.mubr.bf16.vlgmr.msra.gmra.mxu1 %v550_v11 }
  0x3e   :  { %502 = vmatprep.mubr.bf16.mxu0 %v547_v12  ;;  %510 = vmatprep.mubr.bf16.mxu1 %v551_v13 }
  0x45   :  { %503 = vmatmul.mubr.bf16.gmra.mxu0 %v548_v14  ;;  %511 = vmatmul.mubr.bf16.gmra.mxu1 %v552_v15 }
  0xfd   :  { %v500_v16 = vpop.f32.mrf.mxu0  ;;  %v508_v18 = vpop.f32.mrf.mxu1 }
  0xff   :  { %v209_v17 = vpop.f32.mrf.mxu0  ;;  %v241_v21 = vpop.f32.mrf.mxu1 }
 0x101   :  { %v501_v19 = vpop.f32.mrf.mxu0  ;;  %v509_v26 = vpop.f32.mrf.mxu1 }
 0x103   :  { %v212_v20 = vpop.f32.mrf.mxu0  ;;  %v244_v31 = vpop.f32.mrf.mxu1 }
 0x104   :  { %v272_v22 = vadd.f32 %v212_v20, %v209_v17 }
 0x105   :  { %v504_v23 = vpop.f32.mrf.mxu0  ;;  %v512_v34 = vpop.f32.mrf.mxu1 }
 0x106   :  { %v273_v24 = vadd.f32 %v500_v16, %v272_v22 }
 0x107   :  { %v225_v25 = vpop.f32.mrf.mxu0  ;;  %v257_v37 = vpop.f32.mrf.mxu1 }
 0x108   :  { %v274_v27 = vadd.f32 %v501_v19, %v273_v24 }
 0x109   :  { %v505_v28 = vpop.f32.mrf.mxu0  ;;  %v513_v40 = vpop.f32.mrf.mxu1 }
 0x10a   :  { %v275_v29 = vadd.f32 %v274_v27, %v225_v25 }
 0x10b   :  { %v228_v30 = vpop.f32.mrf.mxu0  ;;  %v260_v43 = vpop.f32.mrf.mxu1 }
 0x10c   :  { %v276_v32 = vadd.f32 %v275_v29, %v228_v30 }
 0x10e   :  { %v277_v33 = vadd.f32 %v504_v23, %v276_v32 }
 0x110   :  { %v278_v35 = vadd.f32 %v505_v28, %v277_v33 }
 0x112   :  { %v279_v36 = vadd.f32 %v278_v35, %v241_v21 }
 0x114   :  { %v280_v38 = vadd.f32 %v279_v36, %v244_v31 }
 0x116   :  { %v281_v39 = vadd.f32 %v508_v18, %v280_v38 }
 0x118   :  { %v282_v41 = vadd.f32 %v509_v26, %v281_v39 }
 0x11a   :  { %v283_v42 = vadd.f32 %v282_v41, %v257_v37 }
 0x11c   :  { %v284_v44 = vadd.f32 %v283_v42, %v260_v43 }
 0x11e   :  { %v285_v45 = vadd.f32 %v512_v34, %v284_v44 }
 0x120   :  { %v286_v46 = vadd.f32 %v513_v40, %v285_v45 }
 0x122   :  { %v287_v47 = vrot.slane %v286_v46, 4 }
 0x124   :  { %v288_v48 = vadd.f32 %v287_v47, %v286_v46 }
 0x126   :  { %v289_v49 = vrot.slane %v288_v48, 2 }
 0x128   :  { %v290_v50 = vadd.f32 %v289_v49, %v288_v48 }
 0x12a   :  { %v291_v51 = vrot.slane %v290_v50, 1 }
 0x12c   :  { %v292_v52 = vadd.f32 %v291_v51, %v290_v50  ;;  %v354_v51 = vld [vmem:[%s707_s2] sm:$0x1] }
 0x12e   :  { %v293_v53 = vmul.f32 0.0078125, %v292_v52 }
 0x130   :  { %v659_v54 = vsub.f32 %v209_v17, %v293_v53  ;;  %v661_v55 = vsub.f32 %v212_v20, %v293_v53  ;;  %v663_v56 = vsub.f32 %v500_v16, %v293_v53  ;;  %v669_v59 = vsub.f32 %v501_v19, %v293_v53 }
 0x131   :  { %v671_v60 = vsub.f32 %v225_v25, %v293_v53  ;;  %v675_v63 = vsub.f32 %v228_v30, %v293_v53  ;;  %v300_v2 = vsub.f32 %v504_v23, %v293_v53  ;;  %v301_v5 = vsub.f32 %v505_v28, %v293_v53 }
 0x132   :  { %v310_v57 = vmul.f32 %v659_v54, %v659_v54  ;;  %v311_v58 = vmul.f32 %v661_v55, %v661_v55  ;;  %v312_v61 = vmul.f32 %v663_v56, %v663_v56  ;;  %v313_v0 = vmul.f32 %v669_v59, %v669_v59 }
 0x133   :  { %v314_v3 = vmul.f32 %v671_v60, %v671_v60  ;;  %v315_v6 = vmul.f32 %v675_v63, %v675_v63  ;;  %v302_v8 = vsub.f32 %v241_v21, %v293_v53  ;;  %v316_v9 = vmul.f32 %v300_v2, %v300_v2 }
 0x134   :  { %v326_v62 = vadd.f32 %v311_v58, %v310_v57  ;;  %v303_v11 = vsub.f32 %v244_v31, %v293_v53  ;;  %v317_v12 = vmul.f32 %v301_v5, %v301_v5  ;;  %v304_v14 = vsub.f32 %v508_v18, %v293_v53 }
 0x135   :  { %v318_v15 = vmul.f32 %v302_v8, %v302_v8  ;;  %v305_v17 = vsub.f32 %v509_v26, %v293_v53  ;;  %v306_v22 = vsub.f32 %v257_v37, %v293_v53  ;;  %v307_v25 = vsub.f32 %v260_v43, %v293_v53 }
 0x136   :  { %v327_v1 = vadd.f32 %v326_v62, %v312_v61  ;;  %v319_v19 = vmul.f32 %v303_v11, %v303_v11  ;;  %v320_v23 = vmul.f32 %v304_v14, %v304_v14  ;;  %v308_v29 = vsub.f32 %v512_v34, %v293_v53 }
 0x137   :  { %v321_v27 = vmul.f32 %v305_v17, %v305_v17  ;;  %v322_v30 = vmul.f32 %v306_v22, %v306_v22  ;;  %v309_v32 = vsub.f32 %v513_v40, %v293_v53  ;;  %v323_v33 = vmul.f32 %v307_v25, %v307_v25 }
 0x138   :  { %v328_v4 = vadd.f32 %v327_v1, %v313_v0  ;;  %v324_v35 = vmul.f32 %v308_v29, %v308_v29  ;;  %v347_v44 = vmul.f32 0.0, %v293_v53  ;;  %v356_v40 = vlaneseq }
 0x139   :  { %v325_v18 = vmul.f32 %v309_v32, %v309_v32 }
 0x13a   :  { %v329_v7 = vadd.f32 %v328_v4, %v314_v3  ;;  %v348_v46 = vmul.f32 %v347_v44, %v293_v53  ;;  %v357_v50 = vshrl.u32 %v356_v40, 7 }
 0x13c   :  { %v330_v10 = vadd.f32 %v329_v7, %v315_v6  ;;  %v358_v52 = vsub.s32 0, %v357_v50 }
 0x13e   :  { %v331_v13 = vadd.f32 %v330_v10, %v316_v9  ;;  %v465_v9 = vld [vmem:[%s708_s3] ss:$0 sm:$0xff]  ;;  %s625_s3 = smov [#allocation7]  }
 0x13f   :  { %s436_s28 = sshll.u32 %s625_s3, 4  ;;  %s695_s28 = int_to_ptr.vmem [resolvable:$true] %s436_s28 }
 0x140   :  { %v332_v16 = vadd.f32 %v331_v13, %v317_v12  ;;  %s595_s29 = scalar_lea.vmem %s695_s28, 2048  ;;  %p600_p11 = scmp.lt.s32.totalorder %s695_s28, %s695_s28 }
 0x141   :  { %p596_p10 = scmp.ne.s32.totalorder %s695_s28, %s595_s29  ;;  %p601_p12 = scmp.lt.s32.totalorder %s595_s29, %s595_s29 }
 0x142   :  { %v333_v20 = vadd.f32 %v332_v16, %v318_v15 }
 0x143   :  { %p602_p13 = por %p601_p12, %p600_p11 }
 0x144   :  { %v334_v24 = vadd.f32 %v333_v20, %v319_v19 }
 0x145   :  { %p603_p0 = pnand %p602_p13, %p596_p10 }
 0x146   :  { %v335_v28 = vadd.f32 %v334_v24, %v320_v23 }
 0x148   :  { %v336_v21 = vadd.f32 %v335_v28, %v321_v27 }
 0x14a   :  { %v337_v31 = vadd.f32 %v336_v21, %v322_v30 }
 0x14c   :  { %v338_v36 = vadd.f32 %v337_v31, %v323_v33 }
 0x14e   :  { %v339_v38 = vadd.f32 %v338_v36, %v324_v35 }
 0x150   :  { %v340_v39 = vadd.f32 %v339_v38, %v325_v18 }
 0x152   :  { %v341_v26 = vrot.slane %v340_v39, 4 }
 0x154   :  { %v342_v41 = vadd.f32 %v341_v26, %v340_v39 }
 0x156   :  { %v343_v42 = vrot.slane %v342_v41, 2 }
 0x158   :  { %v344_v37 = vadd.f32 %v343_v42, %v342_v41 }
 0x15a   :  { %v345_v45 = vrot.slane %v344_v37, 1 }
 0x15c   :  { %v346_v43 = vadd.f32 %v345_v45, %v344_v37 }
 0x15e   :  { %v349_v47 = vsub.f32 %v346_v43, %v348_v46 }
 0x160   :  { %v350_v34 = vmul.f32 0.0078125, %v349_v47 }
 0x162   :  { %v351_v48 = vmax.f32 %v350_v34, 0.0 }
 0x164   :  { %v352_v49 = vadd.f32 1e-05, %v351_v48 }
 0x166   :  { %553 = vrsqrt.f32 %v352_v49 }
 0x173   :  { %v554_v57 = vpop.eup %553 }
 0x174   :  { %v355_v58 = vmul.f32 %v554_v57, %v354_v51 }
 0x176   :  { %v359_v61 = vrot.slane %v355_v58, %v358_v52 }
 0x178   :  { %v360_v62 = vmul.f32 %v359_v61, %v659_v54  ;;  %v361_v0 = vmul.f32 %v359_v61, %v661_v55  ;;  %v362_v53 = vmul.f32 %v359_v61, %v663_v56  ;;  %v363_v1 = vmul.f32 %v359_v61, %v669_v59 }
 0x179   :  { %v364_v3 = vmul.f32 %v359_v61, %v671_v60  ;;  %v365_v4 = vmul.f32 %v359_v61, %v675_v63  ;;  %v366_v6 = vmul.f32 %v359_v61, %v300_v2  ;;  %v367_v7 = vmul.f32 %v359_v61, %v301_v5 }
 0x17a   :  { %v368_v10 = vmul.f32 %v359_v61, %v302_v8  ;;  %v369_v12 = vmul.f32 %v359_v61, %v303_v11  ;;  %v370_v13 = vmul.f32 %v359_v61, %v304_v14  ;;  %v371_v54 = vmul.f32 %v359_v61, %v305_v17 }
 0x17b   :  { %v372_v15 = vmul.f32 %v359_v61, %v306_v22  ;;  %v373_v55 = vmul.f32 %v359_v61, %v307_v25  ;;  %v374_v16 = vmul.f32 %v359_v61, %v308_v29  ;;  %v375_v56 = vmul.f32 %v359_v61, %v309_v32 }
 0x17c   :  { %v383_v19 = vadd.f32 %v465_v9, %v360_v62  ;;  %v384_v59 = vadd.f32 %v465_v9, %v361_v0  ;;  %v385_v20 = vadd.f32 %v465_v9, %v362_v53  ;;  %v386_v60 = vadd.f32 %v465_v9, %v363_v1 }
 0x17d   :  { %v387_v23 = vadd.f32 %v465_v9, %v364_v3  ;;  %v388_v63 = vadd.f32 %v465_v9, %v365_v4  ;;  %v389_v2 = vadd.f32 %v465_v9, %v366_v6  ;;  %v390_v5 = vadd.f32 %v465_v9, %v367_v7 }
 0x17e   :  { %v391_v24 = vadd.f32 %v465_v9, %v368_v10  ;;  %v392_v27 = vadd.f32 %v465_v9, %v369_v12  ;;  %v393_v28 = vadd.f32 %v465_v9, %v370_v13  ;;  %v394_v30 = vadd.f32 %v465_v9, %v371_v54 }
 0x17f   :  { %v395_v8 = vadd.f32 %v465_v9, %v372_v15  ;;  %v396_v11 = vadd.f32 %v465_v9, %v373_v55  ;;  %v397_v14 = vadd.f32 %v465_v9, %v374_v16  ;;  %v398_v17 = vadd.f32 %v465_v9, %v375_v56 }
 0x180   :  { %v399_v22 = vmax.f32 %v383_v19, 0.0  ;;  %v400_v25 = vmax.f32 %v384_v59, 0.0  ;;  %v401_v29 = vmax.f32 %v385_v20, 0.0  ;;  %v402_v21 = vmax.f32 %v386_v60, 0.0 }
 0x181   :  { %v403_v32 = vmax.f32 %v387_v23, 0.0  ;;  %v404_v33 = vmax.f32 %v388_v63, 0.0  ;;  %v405_v31 = vmax.f32 %v389_v2, 0.0  ;;  %v406_v35 = vmax.f32 %v390_v5, 0.0 }
 0x182   :  { %v407_v36 = vmax.f32 %v391_v24, 0.0  ;;  %v408_v18 = vmax.f32 %v392_v27, 0.0  ;;  %v409_v38 = vmax.f32 %v393_v28, 0.0  ;;  %v410_v39 = vmax.f32 %v394_v30, 0.0  ;;  %415 = vst [vmem:[#allocation7] sm:$0xff] %v399_v22  ;;  %416 = vst [vmem:[#allocation7 + $0x8] sm:$0xff] %v400_v25 }
 0x183   :  { %417 = vst [vmem:[#allocation7 + $0x10] sm:$0xff] %v401_v29  ;;  %418 = vst [vmem:[#allocation7 + $0x18] sm:$0xff] %v402_v21  ;;  %v411_v26 = vmax.f32 %v395_v8, 0.0  ;;  %v412_v41 = vmax.f32 %v396_v11, 0.0  ;;  %v413_v42 = vmax.f32 %v397_v14, 0.0  ;;  %v414_v37 = vmax.f32 %v398_v17, 0.0 }
 0x184   :  { %419 = vst [vmem:[#allocation7 + $0x20] sm:$0xff] %v403_v32  ;;  %420 = vst [vmem:[#allocation7 + $0x28] sm:$0xff] %v404_v33 }
 0x185   :  { %421 = vst [vmem:[#allocation7 + $0x30] sm:$0xff] %v405_v31  ;;  %422 = vst [vmem:[#allocation7 + $0x38] sm:$0xff] %v406_v35 }
 0x186   :  { %423 = vst [vmem:[#allocation7 + $0x40] sm:$0xff] %v407_v36  ;;  %424 = vst [vmem:[#allocation7 + $0x48] sm:$0xff] %v408_v18 }
 0x187   :  { %425 = vst [vmem:[#allocation7 + $0x50] sm:$0xff] %v409_v38  ;;  %426 = vst [vmem:[#allocation7 + $0x58] sm:$0xff] %v410_v39 }
 0x188   :  { %427 = vst [vmem:[#allocation7 + $0x60] sm:$0xff] %v411_v26  ;;  %428 = vst [vmem:[#allocation7 + $0x68] sm:$0xff] %v412_v41 }
 0x189   :  { %429 = vst [vmem:[#allocation7 + $0x70] sm:$0xff] %v413_v42  ;;  %430 = vst [vmem:[#allocation7 + $0x78] sm:$0xff] %v414_v37 }
 0x18a   :  { %606 = shalt.err (!%p603_p0)
}
 0x18b   :  { %s626_s30 = smov 128   ;;  %s627_s5 = smov 8  }
 0x18c   :  { %442 = dma.vmem_to_hbm [thread:$0]  %s695_s28, 2048, %s709_s4, [#allocation4], %s626_s30, %s626_s30, %s627_s5  }
 0x18d   :  { %619 = dma.done.wait [#allocation4], 2048  }
 0x18e   :  { %620 = vsyncadd [#allocation4], 4294965248 }
 0x18f   :  { %446 = vsyncpa [#allocation3], 1 }
 0x190   :  { %447 = vsyncpa [#allocation6], 1 }
 0x191   :  { %448 = vsyncpa [#allocation4], 1 }

</bundles_post_ra>
